<compile_context>
chip_gen: v7x
topology: tpu7x:2x2x1
jax: 0.10.0
libtpu: 0.0.40
codegen_flags: <defaults>
</compile_context>

<pallas_src>
import jax
import jax.numpy as jnp
from jax.experimental import pallas as pl
from jax.experimental.pallas import tpu as pltpu


def discriminator_kernel(x_ref, w1_ref, b1_ref, w2_ref, b2_ref, o_ref):
    # ---- Linear 1: [TB, D] @ [D, H] on the MXU (bf16 inputs, f32 accumulate) ----
    x = x_ref[...].astype(jnp.bfloat16)  # no-op if x already arrives as bf16
    h = jnp.dot(x, w1_ref[...], preferred_element_type=jnp.float32) + b1_ref[...]
    # ---- LeakyReLU(0.2): VPU elementwise, f32 ----
    h = jnp.where(h > 0, h, 0.2 * h)
    # ---- Linear 2 (out_features == 1): VPU multiply, XLU transpose + sublane-reduce
    #      so the result lands lane-dense (batch on the lane axis) ----
    hw_t = jnp.transpose(h * w2_ref[...])                      # (H, TB), XLU (idle unit)
    logits = jnp.sum(hw_t, axis=0, keepdims=True) + b2_ref[0, 0]  # (1, TB)
    # ---- Sigmoid: EUP exp + approx EUP reciprocal, clamped to [0, 1] ----
    p = pl.reciprocal(1.0 + jnp.exp(-logits), approx=True)
    p = jnp.clip(p, 0.0, 1.0)
    o_ref[...] = jnp.reshape(p, o_ref.shape).astype(o_ref.dtype)


def discriminator_forward(x, w1, b1, w2, b2, *, tb=1024):
    """x: [B, img_dim] (f32 or bf16); w1: [img_dim, 128]; b1: [.., 128];
    w2: [128, 1]; b2: [.., 1].  Returns [B, 1] f32 probabilities."""
    B, D = x.shape
    H = w1.shape[1]
    itemsize = jnp.dtype(x.dtype).itemsize

    # Batch tile: round DOWN to a multiple of 8 sublanes (partial last grid block is
    # legal and handled by Pallas); never fall back to tb=B at large B.
    if B < 8:
        tb = B
    else:
        tb = max(8, (min(tb, B) // 8) * 8)
    num_tiles = pl.cdiv(B, tb)

    w1_bf16 = w1.astype(jnp.bfloat16)    # tiny, grid-resident; halves W1 DMA
    w2_row = jnp.reshape(w2, (1, H))     # lane-aligned row for the VPU reduction
    b1_row = jnp.reshape(b1, (1, H))
    b2_s = jnp.reshape(b2, (1, 1))       # scalar via SMEM (no padded VMEM tile)

    # Advisory cost hint for XLA's scheduler around this custom call.
    cost = pl.CostEstimate(
        flops=int(2 * B * D * H + 2 * B * H),
        transcendentals=int(B),
        bytes_accessed=int(B * D * itemsize + D * H * 2 + 2 * H * 4 + 4
                           + num_tiles * tb * 4),
    )

    # VMEM footprint estimate; only raise the scoped limit when we actually need it
    # (tb=1024 f32 is ~10 MiB, under every chip's default; tb>=2048 on v7x is not).
    vmem_est = (2 * tb * D * itemsize          # x double buffer
                + tb * D * 2                   # in-kernel bf16 copy of the x tile
                + 4 * tb * H * 4               # h / hw / hw_t f32 temporaries
                + 2 * (D * H * 2 + 4 * H * 4)  # resident weights (double-buffered)
                + 2 * tb * 4)                  # output double buffer
    cp_kwargs = dict(dimension_semantics=("parallel",))
    if vmem_est > (16 << 20):
        cp_kwargs["vmem_limit_bytes"] = int(min(vmem_est * 3 // 2, 60 << 20))

    out = pl.pallas_call(
        discriminator_kernel,
        out_shape=jax.ShapeDtypeStruct((num_tiles, 1, tb), jnp.float32),
        grid=(num_tiles,),
        in_specs=[
            pl.BlockSpec((tb, D), lambda i: (i, 0)),            # x: batch-tiled
            pl.BlockSpec((D, H), lambda i: (0, 0)),             # W1: VMEM-resident
            pl.BlockSpec((1, H), lambda i: (0, 0)),             # b1: resident
            pl.BlockSpec((1, H), lambda i: (0, 0)),             # W2 row: resident
            pl.BlockSpec(memory_space=pltpu.MemorySpace.SMEM),  # b2: SMEM scalar
        ],
        out_specs=pl.BlockSpec((1, 1, tb), lambda i: (i, 0, 0)),  # lane-dense slab
        compiler_params=pltpu.CompilerParams(**cp_kwargs),
        cost_estimate=cost,
    )(x, w1_bf16, b1_row, w2_row, b2_s)

    # Un-tile the lane-dense slab back to the module's (B, 1) layout; rows beyond B
    # (partial last tile) are undefined and sliced off here.
    return out.reshape(num_tiles * tb, 1)[:B]


def init_params(key, img_dim=28 * 28, hidden=128):
    """Deterministic init mirroring nn.Linear default (U[-1/sqrt(fan_in), +...])."""
    k1, k2, k3, k4 = jax.random.split(key, 4)
    lim1 = 1.0 / jnp.sqrt(img_dim)
    lim2 = 1.0 / jnp.sqrt(hidden)
    w1 = jax.random.uniform(k1, (img_dim, hidden), jnp.float32, -lim1, lim1)
    b1 = jax.random.uniform(k2, (1, hidden), jnp.float32, -lim1, lim1)
    w2 = jax.random.uniform(k3, (hidden, 1), jnp.float32, -lim2, lim2)
    b2 = jax.random.uniform(k4, (1, 1), jnp.float32, -lim2, lim2)
    return w1, b1, w2, b2


def reference_forward(x, w1, b1, w2, b2):
    """Pure-JAX reference matching the kernel's bf16 MXU feed (rest in f32)."""
    h = jnp.dot(x.astype(jnp.bfloat16), w1.astype(jnp.bfloat16),
                preferred_element_type=jnp.float32) + b1
    h = jnp.where(h > 0, h, 0.2 * h)
    return jax.nn.sigmoid(h @ w2 + b2)


if __name__ == "__main__":
    key = jax.random.PRNGKey(0)
    kx, kp = jax.random.split(key)

    B, IMG_DIM, HIDDEN = 16, 28 * 28, 128  # small batch; img_dim from the module default
    x = jax.random.normal(kx, (B, IMG_DIM), jnp.float32)
    w1, b1, w2, b2 = init_params(kp, IMG_DIM, HIDDEN)

    # Check 1: f32 input, single tile (tb clamps to B), lane-dense output path.
    out = jax.block_until_ready(discriminator_forward(x, w1, b1, w2, b2))
    ref = reference_forward(x, w1, b1, w2, b2)
    assert out.shape == (B, 1)
    assert jnp.allclose(out, ref, atol=5e-3, rtol=5e-3), float(jnp.max(jnp.abs(out - ref)))

    # Check 2: bf16 input (upstream producer emits bf16), grid > 1 with a partial
    # last batch tile (B % tb != 0) exercising the pipelined path.
    B2 = 20
    x2 = jax.random.normal(kx, (B2, IMG_DIM), jnp.float32).astype(jnp.bfloat16)
    out2 = jax.block_until_ready(discriminator_forward(x2, w1, b1, w2, b2, tb=8))
    ref2 = reference_forward(x2.astype(jnp.float32), w1, b1, w2, b2)
    assert out2.shape == (B2, 1)
    assert jnp.allclose(out2, ref2, atol=5e-3, rtol=5e-3), float(jnp.max(jnp.abs(out2 - ref2)))

    print("KERNEL_OK")
</pallas_src>

<mosaic_0001>
module attributes {stable_mosaic.version = 11 : i64} {
  func.func @discriminator_kernel(%arg0: i32, %arg1: memref<16x784xf32, #tpu.memory_space<vmem>>, %arg2: memref<784x128xbf16, #tpu.memory_space<vmem>>, %arg3: memref<1x128xf32, #tpu.memory_space<vmem>>, %arg4: memref<1x128xf32, #tpu.memory_space<vmem>>, %arg5: memref<1x1xf32, #tpu.memory_space<smem>>, %arg6: memref<1x1x16xf32, #tpu.memory_space<vmem>>) attributes {dimension_semantics = [#tpu.dimension_semantics<parallel>], iteration_bounds = array<i64: 1>, scalar_prefetch = 0 : i64, scratch_operands = 0 : i64, tpu.core_type = #tpu.core_type<tc>, window_params = [{transform_indices = @transform_0, window_bounds = array<i64: 16, 784>}, {pipeline_mode = #tpu.pipeline_mode<synchronous>, transform_indices = @transform_1, window_bounds = array<i64: 784, 128>}, {pipeline_mode = #tpu.pipeline_mode<synchronous>, transform_indices = @transform_2, window_bounds = array<i64: 1, 128>}, {pipeline_mode = #tpu.pipeline_mode<synchronous>, transform_indices = @transform_3, window_bounds = array<i64: 1, 128>}, {transform_indices = @transform_4, window_bounds = array<i64: 1, 1>}, {transform_indices = @transform_5, window_bounds = array<i64: 1, 1, 16>}]} {
    %c0 = arith.constant 0 : index
    %c0_0 = arith.constant 0 : index
    %0 = vector.load %arg1[%c0, %c0_0] : memref<16x784xf32, #tpu.memory_space<vmem>>, vector<16x784xf32>
    %1 = arith.truncf %0 : vector<16x784xf32> to vector<16x784xbf16>
    %c0_1 = arith.constant 0 : index
    %c0_2 = arith.constant 0 : index
    %2 = vector.load %arg2[%c0_1, %c0_2] : memref<784x128xbf16, #tpu.memory_space<vmem>>, vector<784x128xbf16>
    %cst = arith.constant dense<0.000000e+00> : vector<16x128xf32>
    %3 = tpu.matmul %1, %2, %cst {dimension_numbers = #tpu.dot_dimension_numbers<[1], [0], [0], [1], [0, 0, 1, 1], [], []>} : vector<16x784xbf16>, vector<784x128xbf16>, vector<16x128xf32> -> vector<16x128xf32>
    %c0_3 = arith.constant 0 : index
    %c0_4 = arith.constant 0 : index
    %4 = vector.load %arg3[%c0_3, %c0_4] : memref<1x128xf32, #tpu.memory_space<vmem>>, vector<1x128xf32>
    %5 = vector.broadcast %4 : vector<1x128xf32> to vector<16x128xf32>
    %6 = arith.addf %3, %5 : vector<16x128xf32>
    %cst_5 = arith.constant 0.000000e+00 : f32
    %7 = vector.broadcast %cst_5 : f32 to vector<16x128xf32>
    %8 = arith.cmpf ogt, %6, %7 : vector<16x128xf32>
    %cst_6 = arith.constant 2.000000e-01 : f32
    %9 = vector.broadcast %cst_6 : f32 to vector<16x128xf32>
    %10 = arith.mulf %9, %6 : vector<16x128xf32>
    %11 = arith.select %8, %6, %10 : vector<16x128xi1>, vector<16x128xf32>
    %c0_7 = arith.constant 0 : index
    %c0_8 = arith.constant 0 : index
    %12 = vector.load %arg4[%c0_7, %c0_8] : memref<1x128xf32, #tpu.memory_space<vmem>>, vector<1x128xf32>
    %13 = vector.broadcast %12 : vector<1x128xf32> to vector<16x128xf32>
    %14 = arith.mulf %11, %13 : vector<16x128xf32>
    %15 = tpu.transpose %14, [1, 0] : vector<16x128xf32> -> vector<128x16xf32>
    %cst_9 = arith.constant dense<0.000000e+00> : vector<16xf32>
    %16 = vector.multi_reduction <add>, %15, %cst_9 [0] : vector<128x16xf32> to vector<16xf32>
    %17 = vector.shape_cast %16 : vector<16xf32> to vector<1x16xf32>
    %c0_10 = arith.constant 0 : index
    %c0_11 = arith.constant 0 : index
    %18 = memref.load %arg5[%c0_10, %c0_11] : memref<1x1xf32, #tpu.memory_space<smem>>
    %19 = vector.broadcast %18 : f32 to vector<1x16xf32>
    %20 = arith.addf %17, %19 : vector<1x16xf32>
    %cst_12 = arith.constant 0.000000e+00 : f32
    %21 = vector.broadcast %cst_12 : f32 to vector<1x16xf32>
    %22 = arith.subf %21, %20 : vector<1x16xf32>
    %23 = math.exp %22 : vector<1x16xf32>
    %cst_13 = arith.constant 1.000000e+00 : f32
    %24 = vector.broadcast %cst_13 : f32 to vector<1x16xf32>
    %25 = arith.addf %24, %23 : vector<1x16xf32>
    %26 = tpu.reciprocal %25 {approx = true} : vector<1x16xf32> -> vector<1x16xf32>
    %cst_14 = arith.constant 0.000000e+00 : f32
    %cst_15 = arith.constant 1.000000e+00 : f32
    %27 = vector.broadcast %cst_14 : f32 to vector<1x16xf32>
    %28 = arith.maximumf %27, %26 : vector<1x16xf32>
    %29 = vector.broadcast %cst_15 : f32 to vector<1x16xf32>
    %30 = arith.minimumf %29, %28 : vector<1x16xf32>
    %31 = vector.shape_cast %30 : vector<1x16xf32> to vector<1x1x16xf32>
    %c0_16 = arith.constant 0 : index
    %c0_17 = arith.constant 0 : index
    %c0_18 = arith.constant 0 : index
    %32 = vector.load %arg6[%c0_16, %c0_17, %c0_18] : memref<1x1x16xf32, #tpu.memory_space<vmem>>, vector<1x1x16xf32>
    tpu.vector_store %arg6[%c0_16, %c0_17, %c0_18], %31 {strides = array<i32>} : memref<1x1x16xf32, #tpu.memory_space<vmem>>, vector<1x1x16xf32>,
    return
  }
  func.func @transform_0(%arg0: i32) -> (i32, i32) {
    %c0_i32 = arith.constant 0 : i32
    %c0_i32_0 = arith.constant 0 : i32
    return %arg0, %c0_i32 : i32, i32
  }
  func.func @transform_1(%arg0: i32) -> (i32, i32) {
    %c0_i32 = arith.constant 0 : i32
    %c0_i32_0 = arith.constant 0 : i32
    %c0_i32_1 = arith.constant 0 : i32
    return %c0_i32, %c0_i32_0 : i32, i32
  }
  func.func @transform_2(%arg0: i32) -> (i32, i32) {
    %c0_i32 = arith.constant 0 : i32
    %c0_i32_0 = arith.constant 0 : i32
    %c0_i32_1 = arith.constant 0 : i32
    return %c0_i32, %c0_i32_0 : i32, i32
  }
  func.func @transform_3(%arg0: i32) -> (i32, i32) {
    %c0_i32 = arith.constant 0 : i32
    %c0_i32_0 = arith.constant 0 : i32
    %c0_i32_1 = arith.constant 0 : i32
    return %c0_i32, %c0_i32_0 : i32, i32
  }
  func.func @transform_4(%arg0: i32) -> (i32, i32) {
    %c0_i32 = arith.constant 0 : i32
    %c0_i32_0 = arith.constant 0 : i32
    %c0_i32_1 = arith.constant 0 : i32
    return %c0_i32, %c0_i32_0 : i32, i32
  }
  func.func @transform_5(%arg0: i32) -> (i32, i32, i32) {
    %c0_i32 = arith.constant 0 : i32
    %c0_i32_0 = arith.constant 0 : i32
    %c0_i32_1 = arith.constant 0 : i32
    return %arg0, %c0_i32, %c0_i32_0 : i32, i32, i32
  }
}

</mosaic_0001>

<bundles_post_ra>
// kernel: tpu_custom_call.1
= control target key start
LH: loop header
LB: loop body
LE: loop exit
PB: predicated region body
PF: predicated region fallthrough
CT: control target
= control target key end

     0   :  { %11 = vsyncpa [#allocation4], 0  ;;  %s1112_s0 = inlined_call_operand.hbm [shape: f32[16,784], index: 0, kind: input, shape index: {}]   ;;  %s1113_s1 = inlined_call_operand.hbm [shape: bf16[784,128], index: 1, kind: input, shape index: {}]   ;;  %s1114_s2 = inlined_call_operand.vmem [shape: f32[1,128], index: 2, kind: input, shape index: {}]   ;;  %s1115_s3 = inlined_call_operand.vmem [shape: f32[1,128], index: 3, kind: input, shape index: {}]   ;;  %s1116_s4 = inlined_call_operand.<no memory space> [shape: f32[1,1], index: 4, kind: input, shape index: {}]   ;;  %s1117_s5 = inlined_call_operand.hbm [shape: f32[1,1,16], index: 5, kind: output, shape index: {}]  }
   0x1   :  { %12 = vsyncpa [#allocation7], 0 }
   0x2   :  { %13 = vsyncpa [#allocation5], 0  ;;  %s1011_s18 = smov [#allocation3]   ;;  %s939_s22 = scalar_lea.hbm %s1112_s0, 1792 }
   0x3   :  { %s19_s19 = sshll.u32 %s1011_s18, 4  ;;  %p940_p0 = scmp.ne.s32.totalorder %s1112_s0, %s939_s22  ;;  %s20_s19 = int_to_ptr.vmem [resolvable:$true] %s19_s19 }
   0x4   :  { %p943_p1 = scmp.lt.u32.totalorder %s939_s22, %s1112_s0 }
   0x6   :  { %p945_p2 = pnand %p943_p1, %p940_p0 }
   0x8   :  { %948 = shalt.err (!%p945_p2)
}
   0x9   :  { %s949_s27 = scalar_lea.vmem %s20_s19, 1792  ;;  %p954_p4 = scmp.lt.s32.totalorder %s20_s19, %s20_s19 }
   0xa   :  { %p950_p3 = scmp.ne.s32.totalorder %s20_s19, %s949_s27  ;;  %p955_p5 = scmp.lt.s32.totalorder %s949_s27, %s949_s27 }
   0xc   :  { %p956_p6 = por %p955_p5, %p954_p4 }
   0xe   :  { %p957_p7 = pnand %p956_p6, %p950_p3 }
  0x10   :  { %960 = shalt.err (!%p957_p7)
}
  0x11   :  { %s1012_s28 = smov 896   ;;  %s1013_s29 = smov 56  }
  0x12   :  { %25 = dma.hbm_to_vmem [thread:$0]  %s1112_s0, 1792, %s20_s19, [#allocation4], %s1012_s28, %s1012_s28, %s1013_s29  }
  0x13   :  { %s1014_s7 = smov [#allocation6]   ;;  %s961_s11 = scalar_lea.hbm %s1113_s1, 6272 }
  0x14   :  { %s31_s8 = sshll.u32 %s1014_s7, 4  ;;  %p962_p8 = scmp.ne.s32.totalorder %s1113_s1, %s961_s11  ;;  %s32_s8 = int_to_ptr.vmem [resolvable:$true] %s31_s8 }
  0x15   :  { %p965_p9 = scmp.lt.u32.totalorder %s961_s11, %s1113_s1 }
  0x17   :  { %p967_p10 = pnand %p965_p9, %p962_p8 }
  0x19   :  { %970 = shalt.err (!%p967_p10)
}
  0x1a   :  { %s971_s16 = scalar_lea.vmem %s32_s8, 6272  ;;  %p976_p12 = scmp.lt.s32.totalorder %s32_s8, %s32_s8 }
  0x1b   :  { %p972_p11 = scmp.ne.s32.totalorder %s32_s8, %s971_s16  ;;  %p977_p13 = scmp.lt.s32.totalorder %s971_s16, %s971_s16 }
  0x1d   :  { %p978_p0 = por %p977_p13, %p976_p12 }
  0x1f   :  { %p979_p1 = pnand %p978_p0, %p972_p11 }
  0x21   :  { %982 = shalt.err (!%p979_p1)
}
  0x22   :  { %s1015_s0 = smov 64   ;;  %s1016_s17 = smov 4  }
  0x23   :  { %37 = dma.hbm_to_vmem [thread:$0]  %s1113_s1, 6272, %s32_s8, [#allocation7], %s1015_s0, %s1015_s0, %s1016_s17  }
  0x24   :  { %1005 = dma.done.wait [#allocation4], 1792  }
  0x25   :  { %1006 = vsyncadd [#allocation4], 4294965504 }
  0x26   :  { %1007 = dma.done.wait [#allocation7], 6272  }
  0x27   :  { %1008 = vsyncadd [#allocation7], 4294961024  ;;  %v886_v0 = vld [vmem:[#allocation6 + $0x40] sm:$0xff]   ;;  %v890_v4 = vld [vmem:[#allocation6 + $0x48] sm:$0xff]   ;;  %v1017_v43 = vmov 0.0   ;;  %vm1018_vm0 = vmmov 0  }
  0x28   :  { %v887_v1 = vld [vmem:[#allocation6] sm:$0xff]   ;;  %803 = vmatprep.subr.bf16.mxu0 %v886_v0  ;;  %v891_v5 = vld [vmem:[#allocation6 + $0x8] sm:$0xff]   ;;  %v894_v8 = vld [vmem:[#allocation6 + $0x50] sm:$0xff]   ;;  %vm471_vm1 = vcmask 130048   ;;  %s1019_s23 = smov [#allocation8]   ;;  %vm733_vm4 = vcmask 122880  }
  0x29   :  { %v888_v2 = vld [vmem:[#allocation6 + $0xc0] sm:$0xff]   ;;  %804 = vmatpush3.bf16.msra.mxu0 %v887_v1  ;;  %v892_v6 = vld [vmem:[#allocation6 + $0xc8] sm:$0xff]   ;;  %v895_v9 = vld [vmem:[#allocation6 + $0x10] sm:$0xff]   ;;  %s741_s24 = sshll.u32 %s1019_s23, 4  ;;  %s742_s24 = int_to_ptr.vmem [resolvable:$true] %s741_s24 }
  0x2a   :  { %v889_v3 = vld [vmem:[#allocation6 + $0x80] sm:$0xff]   ;;  %825 = vmatprep.subr.bf16.mxu1 %v888_v2  ;;  %805 = vmatprep.subr.bf16.mxu0 %v890_v4  ;;  %v893_v7 = vld [vmem:[#allocation6 + $0x88] sm:$0xff]   ;;  %v896_v10 = vld [vmem:[#allocation6 + $0xd0] sm:$0xff]   ;;  %s983_s25 = scalar_lea.vmem %s742_s24, 16  ;;  %s987_s26 = scalar_lea.vmem %s742_s24, 32 }
  0x2b   :  { %826 = vmatpush3.bf16.msra.mxu1 %v889_v3  ;;  %v897_v11 = vld [vmem:[#allocation6 + $0x90] sm:$0xff]   ;;  %v898_v12 = vld [vmem:[#allocation6 + $0x58] sm:$0xff]   ;;  %v902_v16 = vld [vmem:[#allocation6 + $0x60] sm:$0xff]   ;;  %p984_p2 = scmp.ne.s32.totalorder %s742_s24, %s983_s25  ;;  %p988_p3 = scmp.lt.s32.totalorder %s742_s24, %s742_s24 }
  0x2c   :  { %827 = vmatprep.subr.bf16.mxu1 %v892_v6  ;;  %v899_v13 = vld [vmem:[#allocation6 + $0x18] sm:$0xff]   ;;  %v903_v17 = vld [vmem:[#allocation6 + $0x20] sm:$0xff]   ;;  %v906_v20 = vld [vmem:[#allocation6 + $0x68] sm:$0xff]   ;;  %p989_p4 = scmp.lt.s32.totalorder %s987_s26, %s983_s25 }
  0x2d   :  { %806 = vmatpush3.bf16.msra.mxu0 %v891_v5  ;;  %v900_v14 = vld [vmem:[#allocation6 + $0xd8] sm:$0xff]   ;;  %v904_v18 = vld [vmem:[#allocation6 + $0xe0] sm:$0xff]   ;;  %v907_v21 = vld [vmem:[#allocation6 + $0x28] sm:$0xff]  }
  0x2e   :  { %807 = vmatprep.subr.bf16.mxu0 %v894_v8  ;;  %v901_v15 = vld [vmem:[#allocation6 + $0x98] sm:$0xff]   ;;  %v905_v19 = vld [vmem:[#allocation6 + $0xa0] sm:$0xff]   ;;  %v908_v22 = vld [vmem:[#allocation6 + $0xe8] sm:$0xff]   ;;  %p990_p5 = por %p989_p4, %p988_p3 }
  0x2f   :  { %828 = vmatpush3.bf16.msra.mxu1 %v893_v7  ;;  %v909_v23 = vld [vmem:[#allocation6 + $0xa8] sm:$0xff]   ;;  %v910_v24 = vld [vmem:[#allocation6 + $0x70] sm:$0xff]   ;;  %v914_v28 = vld [vmem:[#allocation6 + $0x78] sm:$0xff]  }
  0x30   :  { %829 = vmatprep.subr.bf16.mxu1 %v896_v10  ;;  %v911_v25 = vld [vmem:[#allocation6 + $0x30] sm:$0xff]   ;;  %v915_v29 = vld [vmem:[#allocation6 + $0x38] sm:$0xff]   ;;  %v58_v36 = vld [vmem:[#allocation3 + $0x38] sm:$0xff]  ;;  %p991_p6 = pnand %p990_p5, %p984_p2 }
  0x31   :  { %808 = vmatpush3.bf16.msra.mxu0 %v895_v9  ;;  %v912_v26 = vld [vmem:[#allocation6 + $0xf0] sm:$0xff]   ;;  %v916_v30 = vld [vmem:[#allocation6 + $0xf8] sm:$0xff]   ;;  %v918_v38 = vld [vmem:[#allocation6 + $0x140] sm:$0xff]  }
  0x32   :  { %809 = vmatprep.subr.bf16.mxu0 %v898_v12  ;;  %v913_v27 = vld [vmem:[#allocation6 + $0xb0] sm:$0xff]   ;;  %v52_v31 = vld [vmem:[#allocation3 + $0x8] sm:$0xff]  ;;  %v54_v39 = vld [vmem:[#allocation3 + $0x18] sm:$0xff] }
  0x33   :  { %830 = vmatpush3.bf16.msra.mxu1 %v897_v11  ;;  %v59_v32 = vld [vmem:[#allocation3 + $0x40] sm:$0xff]  ;;  %v917_v34 = vld [vmem:[#allocation6 + $0xb8] sm:$0xff]   ;;  %v61_v40 = vld [vmem:[#allocation3 + $0x50] sm:$0xff] }
  0x34   :  { %831 = vmatprep.subr.bf16.mxu1 %v900_v14  ;;  %v66_v33 = vpack.c.bf16 %v59_v32, %v52_v31  ;;  %v51_v35 = vld [vmem:[#allocation3] sm:$0xff]  ;;  %v68_v41 = vpack.c.bf16 %v61_v40, %v54_v39  ;;  %v919_v42 = vld [vmem:[#allocation6 + $0x100] sm:$0xff]   ;;  %v60_v45 = vld [vmem:[#allocation3 + $0x48] sm:$0xff] }
  0x35   :  { %810 = vmatpush3.bf16.msra.mxu0 %v899_v13  ;;  %v65_v37 = vpack.c.bf16 %v58_v36, %v51_v35  ;;  %v53_v44 = vld [vmem:[#allocation3 + $0x10] sm:$0xff]  ;;  %v920_v47 = vld [vmem:[#allocation6 + $0x148] sm:$0xff]   ;;  %v922_v49 = vld [vmem:[#allocation6 + $0x150] sm:$0xff]  }
  0x36   :  { %811 = vmatprep.subr.bf16.mxu0 %v902_v16  ;;  %507 = vmatprep.mubr.bf16.mxu0 %v66_v33  ;;  %v67_v46 = vpack.c.bf16 %v60_v45, %v53_v44  ;;  %v921_v48 = vld [vmem:[#allocation6 + $0x108] sm:$0xff]   ;;  %v923_v50 = vld [vmem:[#allocation6 + $0x110] sm:$0xff]   ;;  %v924_v51 = vld [vmem:[#allocation6 + $0x158] sm:$0xff]  }
  0x37   :  { %832 = vmatpush3.bf16.msra.mxu1 %v901_v15  ;;  %548 = vmatprep.mubr.bf16.mxu1 %v68_v41  ;;  %v925_v52 = vld [vmem:[#allocation6 + $0x118] sm:$0xff]   ;;  %v926_v53 = vld [vmem:[#allocation6 + $0x160] sm:$0xff]   ;;  %v928_v55 = vld [vmem:[#allocation6 + $0x168] sm:$0xff]  }
  0x38   :  { %833 = vmatprep.subr.bf16.mxu1 %v904_v18  ;;  %v927_v54 = vld [vmem:[#allocation6 + $0x120] sm:$0xff]   ;;  %v56_v57 = vld [vmem:[#allocation3 + $0x28] sm:$0xff]  ;;  %v63_v58 = vld [vmem:[#allocation3 + $0x60] sm:$0xff] }
  0x39   :  { %812 = vmatpush3.bf16.msra.mxu0 %v903_v17  ;;  %v934_v56 = vld [vmem:[#allocation6 + $0x180] sm:$0xff]   ;;  %v929_v59 = vld [vmem:[#allocation6 + $0x128] sm:$0xff]   ;;  %v70_v60 = vpack.c.bf16 %v63_v58, %v56_v57  ;;  %v64_v62 = vld [vmem:[#allocation3 + $0x68] sm:$0xff] }
  0x3a   :  { %813 = vmatprep.subr.bf16.mxu0 %v906_v20  ;;  %v57_v61 = vld [vmem:[#allocation3 + $0x30] sm:$0xff]  ;;  %v930_v63 = vld [vmem:[#allocation6 + $0x170] sm:$0xff]   ;;  %v932_v2 = vld [vmem:[#allocation6 + $0x178] sm:$0xff]  }
  0x3b   :  { %834 = vmatpush3.bf16.msra.mxu1 %v905_v19  ;;  %v71_v0 = vpack.c.bf16 %v64_v62, %v57_v61  ;;  %v931_v1 = vld [vmem:[#allocation6 + $0x130] sm:$0xff]   ;;  %v933_v3 = vld [vmem:[#allocation6 + $0x138] sm:$0xff]   ;;  %v62_v5 = vld [vmem:[#allocation3 + $0x58] sm:$0xff] }
  0x3c   :  { %835 = vmatprep.subr.bf16.mxu1 %v908_v22  ;;  %v55_v4 = vld [vmem:[#allocation3 + $0x20] sm:$0xff] }
  0x3d   :  { %814 = vmatpush3.bf16.msra.mxu0 %v907_v21  ;;  %v69_v6 = vpack.c.bf16 %v62_v5, %v55_v4  ;;  %v751_v8 = vld [vmem:[%s1114_s2] ss:$0 sm:$0xff] }
  0x3e   :  { %815 = vmatprep.subr.bf16.mxu0 %v910_v24  ;;  %v802_v39 = vld [vmem:[%s1115_s3] ss:$0 sm:$0xff] }
  0x3f   :  { %836 = vmatpush3.bf16.msra.mxu1 %v909_v23 }
  0x40   :  { %837 = vmatprep.subr.bf16.mxu1 %v912_v26 }
  0x41   :  { %816 = vmatpush3.bf16.msra.mxu0 %v911_v25 }
  0x42   :  { %817 = vmatprep.subr.bf16.mxu0 %v914_v28 }
  0x43   :  { %838 = vmatpush3.bf16.msra.mxu1 %v913_v27 }
  0x44   :  { %839 = vmatprep.subr.bf16.mxu1 %v916_v30 }
  0x45   :  { %818 = vmatpush3.bf16.msra.mxu0 %v915_v29 }
  0x46   :  { %847 = vmatprep.subr.bf16.mxu0 %v918_v38 }
  0x47   :  { %840 = vmatpush3.bf16.msra.mxu1 %v917_v34 }
  0x48   :  { %871 = vmatprep.subr.bf16.mxu1 %v1017_v43  ;;  %508 = vmatmul.mubr.bf16.vlgmr.msra.gmra.mrb[0].mxu0 %v65_v37 }
  0x49   :  { %848 = vmatpush3.bf16.msra.mxu0 %v919_v42  ;;  %589 = vmatprep.mubr.bf16.mxu0 %v70_v60 }
  0x4a   :  { %549 = vmatmul.mubr.bf16.vlgmr.msra.gmra.mrb[0].mxu1 %v67_v46  ;;  %849 = vmatprep.subr.bf16.mxu0 %v920_v47 }
  0x4b   :  { %873 = vmatprep.mubr.msk.bf16.mxu1 %vm1018_vm0, %v1017_v43  ;;  %872 = vmatpush3.bf16.msra.mxu1 %v934_v56 }
  0x4d   :  { %850 = vmatpush3.bf16.msra.mxu0 %v921_v48 }
  0x4e   :  { %851 = vmatprep.subr.bf16.mxu0 %v922_v49 }
  0x51   :  { %852 = vmatpush3.bf16.msra.mxu0 %v923_v50 }
  0x52   :  { %853 = vmatprep.subr.bf16.mxu0 %v924_v51  ;;  %874 = vmatmul.mubr.msk.bf16.vlgmr.msra.gmra.mrb[4].mxu1 %vm471_vm1, %v71_v0 }
  0x55   :  { %854 = vmatpush3.bf16.msra.mxu0 %v925_v52 }
  0x56   :  { %855 = vmatprep.subr.bf16.mxu0 %v926_v53 }
  0x59   :  { %856 = vmatpush3.bf16.msra.mxu0 %v927_v54 }
  0x5a   :  { %857 = vmatprep.subr.bf16.mxu0 %v928_v55 }
  0x5d   :  { %858 = vmatpush3.bf16.msra.mxu0 %v929_v59 }
  0x5e   :  { %859 = vmatprep.subr.bf16.mxu0 %v930_v63 }
  0x61   :  { %860 = vmatpush3.bf16.msra.mxu0 %v931_v1 }
  0x62   :  { %861 = vmatprep.subr.bf16.mxu0 %v932_v2 }
  0x65   :  { %862 = vmatpush3.bf16.msra.mxu0 %v933_v3 }
  0x68   :  { %590 = vmatmul.mubr.bf16.vlgmr.msra.gmra.mrb[4].mxu0 %v69_v6 }
 0x11b   :  { %v819_v7 = vpop.f32.mrb[0].mxu0 }
 0x11c   :  { %v820_v9 = vpop.f32.mrb[1].mxu0 }
 0x11d   :  { %v821_v10 = vadd.f32 %v820_v9, %v819_v7  ;;  %v822_v11 = vpop.f32.mrb[2].mxu0  ;;  %v841_v12 = vpop.f32.mrb[0].mxu1 }
 0x11e   :  { %v823_v13 = vpop.f32.mrb[3].mxu0  ;;  %v842_v16 = vpop.f32.mrb[1].mxu1 }
 0x11f   :  { %v510_v14 = vadd.f32 %v821_v10, %v751_v8  ;;  %v824_v15 = vadd.f32 %v823_v13, %v822_v11  ;;  %v843_v17 = vadd.f32 %v842_v16, %v841_v12  ;;  %v844_v18 = vpop.f32.mrb[2].mxu1 }
 0x120   :  { %v845_v20 = vpop.f32.mrb[3].mxu1 }
 0x121   :  { %v513_v19 = vadd.f32 %v824_v15, %v751_v8  ;;  %v551_v21 = vadd.f32 %v843_v17, %v510_v14  ;;  %v846_v22 = vadd.f32 %v845_v20, %v844_v18 }
 0x123   :  { %v554_v23 = vadd.f32 %v846_v22, %v513_v19 }
 0x125   :  { %v632_v24 = vpop.f32.mrb[4].mxu1 }
 0x126   :  { %v875_v25 = vpop.f32.mrb[5].mxu1 }
 0x127   :  { %v635_v26 = vpop.f32.mrb[6].mxu1 }
 0x128   :  { %v876_v27 = vpop.f32.mrb[7].mxu1 }
 0x13b   :  { %v863_v28 = vpop.f32.mrb[4].mxu0 }
 0x13c   :  { %v864_v29 = vpop.f32.mrb[5].mxu0 }
 0x13d   :  { %v865_v30 = vadd.f32 %v864_v29, %v863_v28  ;;  %v866_v31 = vpop.f32.mrb[6].mxu0 }
 0x13e   :  { %v867_v32 = vpop.f32.mrb[7].mxu0 }
 0x13f   :  { %v592_v33 = vadd.f32 %v865_v30, %v551_v21  ;;  %v868_v34 = vadd.f32 %v867_v32, %v866_v31 }
 0x141   :  { %v633_v35 = vadd.f32 %v632_v24, %v592_v33  ;;  %v595_v36 = vadd.f32 %v868_v34, %v554_v23  ;;  %v724_v33 = vstv %s1116_s4 }
 0x143   :  { %v641_v37 = vmul.f32 0.2, %v633_v35  ;;  %v636_v38 = vadd.f32 %v635_v26, %v595_v36  ;;  %vm639_vm2 = vcmp.gt.f32.partialorder %v633_v35, 0.0 }
 0x145   :  { %v642_v40 = vmul.f32 0.2, %v636_v38  ;;  %v643_v41 = vsel %vm639_vm2, %v633_v35, %v641_v37  ;;  %vm640_vm3 = vcmp.gt.f32.partialorder %v636_v38, 0.0 }
 0x146   :  { %v652_v42 = vmul.f32 %v802_v39, %v643_v41 }
 0x147   :  { %v644_v43 = vsel %vm640_vm3, %v636_v38, %v642_v40 }
 0x148   :  { %654 = vxpose.xlu0.b32.start [1/2] (short) %v652_v42, 128  ;;  %v653_v44 = vmul.f32 %v802_v39, %v644_v43 }
 0x14c   :  { %655 = vxpose.xlu0.b32.end [2/2] (short) %v653_v44, 128 }
 0x1c8   :  { %v670_v45 = vpop.trf.xlu0 }
 0x1c9   :  { %v686_v55 = vsel %vm471_vm1, %v670_v45, 0.0 }
 0x1cc   :  { %v671_v46 = vpop.trf.xlu0 }
 0x1cd   :  { %v687_v53 = vsel %vm471_vm1, %v671_v46, 0.0 }
 0x1ce   :  { %v688_v57 = vadd.f32 %v687_v53, %v686_v55 }
 0x1d0   :  { %v672_v47 = vpop.trf.xlu0 }
 0x1d1   :  { %v689_v56 = vsel %vm471_vm1, %v672_v47, 0.0 }
 0x1d2   :  { %v690_v59 = vadd.f32 %v689_v56, %v688_v57 }
 0x1d4   :  { %v673_v48 = vpop.trf.xlu0 }
 0x1d5   :  { %v691_v58 = vsel %vm471_vm1, %v673_v48, 0.0 }
 0x1d6   :  { %v692_v62 = vadd.f32 %v691_v58, %v690_v59 }
 0x1d8   :  { %v674_v49 = vpop.trf.xlu0 }
 0x1d9   :  { %v693_v61 = vsel %vm471_vm1, %v674_v49, 0.0 }
 0x1da   :  { %v694_v0 = vadd.f32 %v693_v61, %v692_v62 }
 0x1dc   :  { %v675_v50 = vpop.trf.xlu0 }
 0x1dd   :  { %v695_v63 = vsel %vm471_vm1, %v675_v50, 0.0 }
 0x1de   :  { %v696_v3 = vadd.f32 %v695_v63, %v694_v0 }
 0x1e0   :  { %v676_v51 = vpop.trf.xlu0 }
 0x1e1   :  { %v697_v2 = vsel %vm471_vm1, %v676_v51, 0.0 }
 0x1e2   :  { %v698_v5 = vadd.f32 %v697_v2, %v696_v3 }
 0x1e4   :  { %v677_v52 = vpop.trf.xlu0 }
 0x1e5   :  { %v699_v4 = vsel %vm471_vm1, %v677_v52, 0.0 }
 0x1e6   :  { %v700_v8 = vadd.f32 %v699_v4, %v698_v5 }
 0x1e8   :  { %v678_v54 = vpop.trf.xlu0 }
 0x1e9   :  { %v701_v7 = vsel %vm471_vm1, %v678_v54, 0.0 }
 0x1ea   :  { %v702_v10 = vadd.f32 %v701_v7, %v700_v8 }
 0x1ec   :  { %v679_v60 = vpop.trf.xlu0 }
 0x1ed   :  { %v703_v9 = vsel %vm471_vm1, %v679_v60, 0.0 }
 0x1ee   :  { %v704_v13 = vadd.f32 %v703_v9, %v702_v10 }
 0x1f0   :  { %v680_v1 = vpop.trf.xlu0 }
 0x1f1   :  { %v705_v12 = vsel %vm471_vm1, %v680_v1, 0.0 }
 0x1f2   :  { %v706_v15 = vadd.f32 %v705_v12, %v704_v13 }
 0x1f4   :  { %v681_v6 = vpop.trf.xlu0 }
 0x1f5   :  { %v707_v14 = vsel %vm471_vm1, %v681_v6, 0.0 }
 0x1f6   :  { %v708_v18 = vadd.f32 %v707_v14, %v706_v15 }
 0x1f8   :  { %v682_v11 = vpop.trf.xlu0 }
 0x1f9   :  { %v709_v17 = vsel %vm471_vm1, %v682_v11, 0.0 }
 0x1fa   :  { %v710_v20 = vadd.f32 %v709_v17, %v708_v18 }
 0x1fc   :  { %v683_v16 = vpop.trf.xlu0 }
 0x1fd   :  { %v711_v19 = vsel %vm471_vm1, %v683_v16, 0.0 }
 0x1fe   :  { %v712_v23 = vadd.f32 %v711_v19, %v710_v20 }
 0x200   :  { %v684_v21 = vpop.trf.xlu0 }
 0x201   :  { %v713_v22 = vsel %vm471_vm1, %v684_v21, 0.0 }
 0x202   :  { %v714_v24 = vadd.f32 %v713_v22, %v712_v23 }
 0x204   :  { %v685_v25 = vpop.trf.xlu0 }
 0x205   :  { %v715_v26 = vsel %vm471_vm1, %v685_v25, 0.0 }
 0x206   :  { %v716_v27 = vadd.f32 %v715_v26, %v714_v24 }
 0x208   :  { %v717_v28 = vrot.slane %v716_v27, 4 }
 0x20a   :  { %v718_v29 = vadd.f32 %v717_v28, %v716_v27 }
 0x20c   :  { %v719_v30 = vrot.slane %v718_v29, 2 }
 0x20e   :  { %v720_v31 = vadd.f32 %v719_v30, %v718_v29 }
 0x210   :  { %v721_v32 = vrot.slane %v720_v31, 1 }
 0x212   :  { %v722_v34 = vadd.f32 %v721_v32, %v720_v31 }
 0x214   :  { %v725_v35 = vadd.f32 %v724_v33, %v722_v34 }
 0x216   :  { %v726_v36 = vsub.f32 0.0, %v725_v35 }
 0x218   :  { %v727_v37 = vmul.f32 1.442695, %v726_v36 }
 0x21a   :  { %935 = vpow2.f32 %v727_v37 }
 0x224   :  { %v936_v38 = vpop.eup %935 }
 0x225   :  { %v729_v39 = vadd.f32 1.0, %v936_v38 }
 0x227   :  { %937 = vrcp.f32 %v729_v39 }
 0x231   :  { %v938_v40 = vpop.eup %937 }
 0x232   :  { %v731_v41 = vmax.f32 %v938_v40, 0.0 }
 0x234   :  { %v732_v42 = vmin.f32 %v731_v41, 1.0 }
 0x236   :  { %734 = vst.msk [vmem:[#allocation8] sm:$0x1] %vm733_vm4, %v732_v42 }
 0x237   :  { %994 = shalt.err (!%p991_p6)
}
 0x238   :  { %s995_s28 = scalar_lea.hbm %s1117_s5, 16 }
 0x239   :  { %p996_p7 = scmp.ne.s32.totalorder %s1117_s5, %s995_s28  ;;  %p999_p8 = scmp.lt.u32.totalorder %s995_s28, %s1117_s5 }
 0x23b   :  { %p1001_p9 = pnand %p999_p8, %p996_p7 }
 0x23d   :  { %1004 = shalt.err (!%p1001_p9)
}
 0x23e   :  { %744 = dma.vmem_to_hbm [thread:$0]  %s742_s24, 16, %s1117_s5, [#allocation5]  }
 0x23f   :  { %1009 = dma.done.wait [#allocation5], 16  }
 0x240   :  { %1010 = vsyncadd [#allocation5], 4294967280 }
 0x241   :  { %748 = vsyncpa [#allocation4], 1 }
 0x242   :  { %749 = vsyncpa [#allocation7], 1 }
 0x243   :  { %750 = vsyncpa [#allocation5], 1 }

</bundles_post_ra>
